<compile_context>
chip_gen: v7x
topology: tpu7x:2x2x1
jax: 0.10.0
libtpu: 0.0.40
codegen_flags: <defaults>
</compile_context>

<pallas_src>
import jax
import jax.numpy as jnp
from jax.experimental import pallas as pl
from jax.experimental.pallas import tpu as pltpu

HIDDEN = 128   # fixed by the module definition
LANES = 128    # TPU lane width; output is padded to a multiple of this


def _policy_kernel(x_ref, w1_ref, b1_ref, w2_ref, b2_ref, out_ref, h_ref):
    # Layer 1: x @ W1 + b1, ReLU.  Intermediate kept in an explicit VMEM
    # scratch so vreg pressure stays bounded for large batch tiles.
    h_ref[...] = jnp.maximum(
        jnp.dot(x_ref[...], w1_ref[...], preferred_element_type=jnp.float32)
        + b1_ref[...],
        0.0,
    )
    # Layer 2: h @ W2p + b2p.  W2/b2 are pre-padded to a full 128-lane output
    # so the final store is unmasked (lane-dense); padded lanes carry a -1e30
    # bias so exp() underflows to 0 and they do not perturb the softmax.
    logits = (
        jnp.dot(h_ref[...], w2_ref[...], preferred_element_type=jnp.float32)
        + b2_ref[...]
    )
    m = jnp.max(logits, axis=-1, keepdims=True)
    e = jnp.exp(logits - m)
    denom = jnp.sum(e, axis=-1, keepdims=True)
    # Exact divide: the approximate EUP reciprocal perturbed the row sums
    # beyond tolerance; at these shapes the divide cost is negligible.
    out_ref[...] = (e / denom).astype(out_ref.dtype)


def policy_net_forward(x, w1, b1, w2, b2, *, block_batch=512):
    batch, n_states = x.shape
    n_actions = w2.shape[1]

    # Pad the output dimension up to a full lane register so stores are
    # lane-dense.  Padded columns: zero weights + -1e30 bias -> softmax ~ 0.
    padded_n = max(LANES, ((n_actions + LANES - 1) // LANES) * LANES)
    pad = padded_n - n_actions
    w2p = jnp.pad(w2, ((0, 0), (0, pad)))
    b2p = jnp.pad(b2, ((0, 0), (0, pad)), constant_values=-1e30)

    out_shape = jax.ShapeDtypeStruct((batch, padded_n), jnp.float32)

    if batch <= block_batch:
        # Small batch: gridless call, everything resident in VMEM. No grid-loop
        # per-step overhead, no double-buffer allocations.
        vmem = pl.BlockSpec(memory_space=pltpu.MemorySpace.VMEM)
        out = pl.pallas_call(
            _policy_kernel,
            out_shape=out_shape,
            in_specs=[vmem, vmem, vmem, vmem, vmem],
            out_specs=vmem,
            scratch_shapes=[pltpu.VMEM((batch, HIDDEN), jnp.float32)],
        )(x, w1, b1, w2p, b2p)
    else:
        # Large batch: tile the batch dim; weights stay resident across tiles.
        # "parallel" lets the runtime shard batch tiles across TensorCores
        # (2 TCs on v7x).  block_batch=512 keeps the f32 working set well
        # under v7x's 32 MiB scoped-VMEM default.
        nb = pl.cdiv(batch, block_batch)
        out = pl.pallas_call(
            _policy_kernel,
            out_shape=out_shape,
            grid=(nb,),
            in_specs=[
                pl.BlockSpec((block_batch, n_states), lambda i: (i, 0)),
                pl.BlockSpec((n_states, HIDDEN), lambda i: (0, 0)),
                pl.BlockSpec((1, HIDDEN), lambda i: (0, 0)),
                pl.BlockSpec((HIDDEN, padded_n), lambda i: (0, 0)),
                pl.BlockSpec((1, padded_n), lambda i: (0, 0)),
            ],
            out_specs=pl.BlockSpec((block_batch, padded_n), lambda i: (i, 0)),
            scratch_shapes=[pltpu.VMEM((block_batch, HIDDEN), jnp.float32)],
            compiler_params=pltpu.CompilerParams(
                dimension_semantics=("parallel",)
            ),
        )(x, w1, b1, w2p, b2p)

    # Drop the lane padding outside the kernel.
    return out[:, :n_actions]


def init_params(key, n_states, n_actions):
    # Deterministic init mimicking PyTorch's nn.Linear default:
    # U(-1/sqrt(fan_in), 1/sqrt(fan_in)) for both weights and biases.
    k1, k2, k3, k4 = jax.random.split(key, 4)
    bound1 = 1.0 / jnp.sqrt(n_states)
    bound2 = 1.0 / jnp.sqrt(HIDDEN)
    w1 = jax.random.uniform(k1, (n_states, HIDDEN), jnp.float32, -bound1, bound1)
    b1 = jax.random.uniform(k2, (1, HIDDEN), jnp.float32, -bound1, bound1)
    w2 = jax.random.uniform(k3, (HIDDEN, n_actions), jnp.float32, -bound2, bound2)
    b2 = jax.random.uniform(k4, (1, n_actions), jnp.float32, -bound2, bound2)
    return w1, b1, w2, b2


def _reference(x, w1, b1, w2, b2):
    h = jnp.maximum(x @ w1 + b1, 0.0)
    return jax.nn.softmax(h @ w2 + b2, axis=-1)


if __name__ == "__main__":
    key = jax.random.PRNGKey(0)
    k_x, k_p, k_x2 = jax.random.split(key, 3)

    n_states, n_actions = 16, 8
    w1, b1, w2, b2 = init_params(k_p, n_states, n_actions)

    # --- Small-batch path (gridless) ---
    batch = 8
    x = jax.random.normal(k_x, (batch, n_states), jnp.float32)
    out = jax.block_until_ready(policy_net_forward(x, w1, b1, w2, b2))
    ref = _reference(x, w1, b1, w2, b2)
    assert out.shape == (batch, n_actions)
    assert jnp.allclose(out, ref, atol=1e-5, rtol=1e-5)
    assert jnp.allclose(jnp.sum(out, axis=-1), 1.0, atol=1e-5)

    # --- Batch-tiled ("parallel" grid) path ---
    batch2, tb = 256, 128
    x2 = jax.random.normal(k_x2, (batch2, n_states), jnp.float32)
    out2 = jax.block_until_ready(
        policy_net_forward(x2, w1, b1, w2, b2, block_batch=tb)
    )
    ref2 = _reference(x2, w1, b1, w2, b2)
    assert out2.shape == (batch2, n_actions)
    assert jnp.allclose(out2, ref2, atol=1e-5, rtol=1e-5)
    assert jnp.allclose(jnp.sum(out2, axis=-1), 1.0, atol=1e-5)

    print("KERNEL_OK")
</pallas_src>

<mosaic_0001>
module attributes {stable_mosaic.version = 11 : i64} {
  func.func @_policy_kernel(%arg0: memref<8x16xf32, #tpu.memory_space<vmem>>, %arg1: memref<16x128xf32, #tpu.memory_space<vmem>>, %arg2: memref<1x128xf32, #tpu.memory_space<vmem>>, %arg3: memref<128x128xf32, #tpu.memory_space<vmem>>, %arg4: memref<1x128xf32, #tpu.memory_space<vmem>>, %arg5: memref<8x128xf32, #tpu.memory_space<vmem>>, %arg6: memref<8x128xf32, #tpu.memory_space<vmem>>) attributes {dimension_semantics = [], scalar_prefetch = 0 : i64, scratch_operands = 1 : i64, tpu.core_type = #tpu.core_type<tc>} {
    %c0 = arith.constant 0 : index
    %c0_0 = arith.constant 0 : index
    %0 = vector.load %arg0[%c0, %c0_0] : memref<8x16xf32, #tpu.memory_space<vmem>>, vector<8x16xf32>
    %c0_1 = arith.constant 0 : index
    %c0_2 = arith.constant 0 : index
    %1 = vector.load %arg1[%c0_1, %c0_2] : memref<16x128xf32, #tpu.memory_space<vmem>>, vector<16x128xf32>
    %cst = arith.constant dense<0.000000e+00> : vector<8x128xf32>
    %2 = tpu.matmul %0, %1, %cst {dimension_numbers = #tpu.dot_dimension_numbers<[1], [0], [0], [1], [0, 0, 1, 1], [], []>} : vector<8x16xf32>, vector<16x128xf32>, vector<8x128xf32> -> vector<8x128xf32>
    %c0_3 = arith.constant 0 : index
    %c0_4 = arith.constant 0 : index
    %3 = vector.load %arg2[%c0_3, %c0_4] : memref<1x128xf32, #tpu.memory_space<vmem>>, vector<1x128xf32>
    %4 = vector.broadcast %3 : vector<1x128xf32> to vector<8x128xf32>
    %5 = arith.addf %2, %4 : vector<8x128xf32>
    %cst_5 = arith.constant 0.000000e+00 : f32
    %6 = vector.broadcast %cst_5 : f32 to vector<8x128xf32>
    %7 = arith.maximumf %5, %6 : vector<8x128xf32>
    %c0_6 = arith.constant 0 : index
    %c0_7 = arith.constant 0 : index
    %8 = vector.load %arg6[%c0_6, %c0_7] : memref<8x128xf32, #tpu.memory_space<vmem>>, vector<8x128xf32>
    tpu.vector_store %arg6[%c0_6, %c0_7], %7 {strides = array<i32>} : memref<8x128xf32, #tpu.memory_space<vmem>>, vector<8x128xf32>,
    %c0_8 = arith.constant 0 : index
    %c0_9 = arith.constant 0 : index
    %9 = vector.load %arg6[%c0_8, %c0_9] : memref<8x128xf32, #tpu.memory_space<vmem>>, vector<8x128xf32>
    %c0_10 = arith.constant 0 : index
    %c0_11 = arith.constant 0 : index
    %10 = vector.load %arg3[%c0_10, %c0_11] : memref<128x128xf32, #tpu.memory_space<vmem>>, vector<128x128xf32>
    %cst_12 = arith.constant dense<0.000000e+00> : vector<8x128xf32>
    %11 = tpu.matmul %9, %10, %cst_12 {dimension_numbers = #tpu.dot_dimension_numbers<[1], [0], [0], [1], [0, 0, 1, 1], [], []>} : vector<8x128xf32>, vector<128x128xf32>, vector<8x128xf32> -> vector<8x128xf32>
    %c0_13 = arith.constant 0 : index
    %c0_14 = arith.constant 0 : index
    %12 = vector.load %arg4[%c0_13, %c0_14] : memref<1x128xf32, #tpu.memory_space<vmem>>, vector<1x128xf32>
    %13 = vector.broadcast %12 : vector<1x128xf32> to vector<8x128xf32>
    %14 = arith.addf %11, %13 : vector<8x128xf32>
    %cst_15 = arith.constant dense<0xFF800000> : vector<8xf32>
    %15 = vector.multi_reduction <maximumf>, %14, %cst_15 [1] : vector<8x128xf32> to vector<8xf32>
    %16 = vector.shape_cast %15 : vector<8xf32> to vector<8x1xf32>
    %17 = vector.broadcast %16 : vector<8x1xf32> to vector<8x128xf32>
    %18 = arith.subf %14, %17 : vector<8x128xf32>
    %19 = math.exp %18 : vector<8x128xf32>
    %cst_16 = arith.constant dense<0.000000e+00> : vector<8xf32>
    %20 = vector.multi_reduction <add>, %19, %cst_16 [1] : vector<8x128xf32> to vector<8xf32>
    %21 = vector.shape_cast %20 : vector<8xf32> to vector<8x1xf32>
    %22 = vector.broadcast %21 : vector<8x1xf32> to vector<8x128xf32>
    %23 = arith.divf %19, %22 : vector<8x128xf32>
    %c0_17 = arith.constant 0 : index
    %c0_18 = arith.constant 0 : index
    %24 = vector.load %arg5[%c0_17, %c0_18] : memref<8x128xf32, #tpu.memory_space<vmem>>, vector<8x128xf32>
    tpu.vector_store %arg5[%c0_17, %c0_18], %23 {strides = array<i32>} : memref<8x128xf32, #tpu.memory_space<vmem>>, vector<8x128xf32>,
    return
  }
}

</mosaic_0001>

<bundles_post_ra>
// kernel: tpu_custom_call.1
= control target key start
LH: loop header
LB: loop body
LE: loop exit
PB: predicated region body
PF: predicated region fallthrough
CT: control target
= control target key end

     0   :  { %10 = vsyncpa [#allocation4], 0  ;;  %s564_s0 = inlined_call_operand.hbm [shape: f32[8,16], index: 0, kind: input, shape index: {}]   ;;  %s565_s1 = inlined_call_operand.hbm [shape: f32[16,128], index: 1, kind: input, shape index: {}]   ;;  %s566_s2 = inlined_call_operand.vmem [shape: f32[1,128], index: 2, kind: input, shape index: {}]   ;;  %s567_s3 = inlined_call_operand.hbm [shape: f32[128,128], index: 3, kind: input, shape index: {}]   ;;  %s568_s4 = inlined_call_operand.vmem [shape: f32[1,128], index: 4, kind: input, shape index: {}]   ;;  %s569_s5 = inlined_call_operand.hbm [shape: f32[8,128], index: 5, kind: output, shape index: {}]  }
   0x1   :  { %11 = vsyncpa [#allocation7], 0 }
   0x2   :  { %12 = vsyncpa [#allocation5], 0  ;;  %s465_s18 = smov [#allocation6]   ;;  %s371_s22 = scalar_lea.hbm %s565_s1, 256 }
   0x3   :  { %s28_s19 = sshll.u32 %s465_s18, 4  ;;  %p372_p0 = scmp.ne.s32.totalorder %s565_s1, %s371_s22  ;;  %s29_s19 = int_to_ptr.vmem [resolvable:$true] %s28_s19 }
   0x4   :  { %p375_p1 = scmp.lt.u32.totalorder %s371_s22, %s565_s1 }
   0x6   :  { %p377_p2 = pnand %p375_p1, %p372_p0 }
   0x8   :  { %380 = shalt.err (!%p377_p2)
}
   0x9   :  { %s381_s27 = scalar_lea.vmem %s29_s19, 256  ;;  %p386_p4 = scmp.lt.s32.totalorder %s29_s19, %s29_s19 }
   0xa   :  { %p382_p3 = scmp.ne.s32.totalorder %s29_s19, %s381_s27  ;;  %p387_p5 = scmp.lt.s32.totalorder %s381_s27, %s381_s27 }
   0xc   :  { %p388_p6 = por %p387_p5, %p386_p4 }
   0xe   :  { %p389_p7 = pnand %p388_p6, %p382_p3 }
  0x10   :  { %392 = shalt.err (!%p389_p7)
}
  0x11   :  { %s466_s28 = smov 128   ;;  %s467_s29 = smov 8  }
  0x12   :  { %34 = dma.hbm_to_vmem [thread:$0]  %s565_s1, 256, %s29_s19, [#allocation7], %s466_s28, %s466_s28, %s467_s29  }
  0x13   :  { %s468_s7 = smov [#allocation3]   ;;  %s469_s9 = smov [#allocation8]  }
  0x14   :  { %s19_s8 = sshll.u32 %s468_s7, 4  ;;  %s42_s10 = sshll.u32 %s469_s9, 4  ;;  %s20_s8 = int_to_ptr.vmem [resolvable:$true] %s19_s8  ;;  %s43_s10 = int_to_ptr.vmem [resolvable:$true] %s42_s10 }
  0x15   :  { %s393_s13 = scalar_lea.hbm %s564_s0, 128 }
  0x16   :  { %p394_p8 = scmp.ne.s32.totalorder %s564_s0, %s393_s13  ;;  %p397_p9 = scmp.lt.u32.totalorder %s393_s13, %s564_s0 }
  0x18   :  { %p399_p10 = pnand %p397_p9, %p394_p8 }
  0x1a   :  { %402 = shalt.err (!%p399_p10)
}
  0x1b   :  { %s403_s1 = scalar_lea.vmem %s20_s8, 128  ;;  %p408_p12 = scmp.lt.s32.totalorder %s20_s8, %s20_s8 }
  0x1c   :  { %p404_p11 = scmp.ne.s32.totalorder %s20_s8, %s403_s1  ;;  %p409_p13 = scmp.lt.s32.totalorder %s403_s1, %s403_s1 }
  0x1e   :  { %p410_p0 = por %p409_p13, %p408_p12 }
  0x20   :  { %p411_p1 = pnand %p410_p0, %p404_p11 }
  0x22   :  { %414 = shalt.err (!%p411_p1)
}
  0x23   :  { %22 = dma.hbm_to_vmem [thread:$0]  %s564_s0, 128, %s20_s8, [#allocation4]  }
  0x24   :  { %s415_s22 = scalar_lea.hbm %s567_s3, 2048 }
  0x25   :  { %p416_p2 = scmp.ne.s32.totalorder %s567_s3, %s415_s22  ;;  %p419_p3 = scmp.lt.u32.totalorder %s415_s22, %s567_s3 }
  0x27   :  { %p421_p4 = pnand %p419_p3, %p416_p2 }
  0x29   :  { %424 = shalt.err (!%p421_p4)
}
  0x2a   :  { %s425_s27 = scalar_lea.vmem %s43_s10, 2048  ;;  %p430_p6 = scmp.lt.s32.totalorder %s43_s10, %s43_s10 }
  0x2b   :  { %p426_p5 = scmp.ne.s32.totalorder %s43_s10, %s425_s27  ;;  %p431_p7 = scmp.lt.s32.totalorder %s425_s27, %s425_s27 }
  0x2d   :  { %p432_p8 = por %p431_p7, %p430_p6 }
  0x2f   :  { %p433_p9 = pnand %p432_p8, %p426_p5 }
  0x31   :  { %436 = shalt.err (!%p433_p9)
}
  0x32   :  { %48 = dma.hbm_to_vmem [thread:$0]  %s567_s3, 2048, %s43_s10, [#allocation7], %s466_s28, %s466_s28, %s467_s29  }
  0x33   :  { %459 = dma.done.wait [#allocation4], 128  }
  0x34   :  { %460 = vsyncadd [#allocation4], 4294967168 }
  0x35   :  { %461 = dma.done.wait [#allocation7], 2304  }
  0x36   :  { %462 = vsyncadd [#allocation7], 4294964992  ;;  %v470_v0 = vmov 0.0|0.0   ;;  %vm471_vm0 = vmmov 0   ;;  %v472_v1 = vmov 0.0   ;;  %v61_v2 = vld [vmem:[#allocation6] sm:$0xff] }
  0x37   :  { %331 = vmatprep.subr.bf16.mxu0 %v470_v0  ;;  %293 = vmatprep.mubr.msk.f32.mxu0 %vm471_vm0, %v472_v1  ;;  %v62_v3 = vld [vmem:[#allocation6 + $0x8] sm:$0xff]  ;;  %v147_v5 = vld [vmem:[#allocation8] sm:$0xff]  ;;  %v148_v6 = vld [vmem:[#allocation8 + $0x8] sm:$0xff]  ;;  %vm70_vm1 = vcmask 130048  }
  0x38   :  { %334 = vmatprep.subr.bf16.mxu1 %v470_v0  ;;  %328 = vmatprep.mubr.msk.f32.mxu1 %vm471_vm0, %v472_v1  ;;  %v332_v4 = vpack.c.bf16 %v62_v3, %v61_v2  ;;  %v149_v7 = vld [vmem:[#allocation8 + $0x10] sm:$0xff]  ;;  %v335_v8 = vpack.c.bf16 %v148_v6, %v147_v5  ;;  %v150_v9 = vld [vmem:[#allocation8 + $0x18] sm:$0xff]  ;;  %v60_v10 = vld [vmem:[#allocation3] sm:$0xff] }
  0x39   :  { %v338_v11 = vpack.c.bf16 %v150_v9, %v149_v7  ;;  %v151_v12 = vld [vmem:[#allocation8 + $0x20] sm:$0xff]  ;;  %v152_v13 = vld [vmem:[#allocation8 + $0x28] sm:$0xff]  ;;  %v153_v15 = vld [vmem:[#allocation8 + $0x30] sm:$0xff] }
  0x3a   :  { %333 = vmatpush3.bf16.msra.mxu0 %v332_v4  ;;  %336 = vmatpush3.bf16.msra.mxu1 %v335_v8  ;;  %v341_v14 = vpack.c.bf16 %v152_v13, %v151_v12  ;;  %v154_v16 = vld [vmem:[#allocation8 + $0x38] sm:$0xff]  ;;  %v155_v18 = vld [vmem:[#allocation8 + $0x40] sm:$0xff]  ;;  %v156_v19 = vld [vmem:[#allocation8 + $0x48] sm:$0xff] }
  0x3b   :  { %337 = vmatprep.subr.bf16.mxu1 %v470_v0  ;;  %v344_v17 = vpack.c.bf16 %v154_v16, %v153_v15  ;;  %v347_v20 = vpack.c.bf16 %v156_v19, %v155_v18  ;;  %v157_v21 = vld [vmem:[#allocation8 + $0x50] sm:$0xff]  ;;  %v158_v22 = vld [vmem:[#allocation8 + $0x58] sm:$0xff]  ;;  %v159_v24 = vld [vmem:[#allocation8 + $0x60] sm:$0xff] }
  0x3c   :  { %v350_v23 = vpack.c.bf16 %v158_v22, %v157_v21  ;;  %v160_v25 = vld [vmem:[#allocation8 + $0x68] sm:$0xff]  ;;  %v161_v27 = vld [vmem:[#allocation8 + $0x70] sm:$0xff]  ;;  %v162_v28 = vld [vmem:[#allocation8 + $0x78] sm:$0xff] }
  0x3d   :  { %294 = vmatmul.mubr.msk.f32.vlgmr.msra.gmra.mrb[0].mxu0 %vm70_vm1, %v60_v10  ;;  %v353_v26 = vpack.c.bf16 %v160_v25, %v159_v24  ;;  %v356_v29 = vpack.c.bf16 %v162_v28, %v161_v27  ;;  %v266_v30 = vld [vmem:[%s566_s2] ss:$0 sm:$0xff]  ;;  %s473_s2 = smov [#allocation9]  }
  0x3e   :  { %339 = vmatpush3.bf16.msra.mxu1 %v338_v11  ;;  %v268_v35 = vld [vmem:[%s568_s4] ss:$0 sm:$0xff]  ;;  %s256_s7 = sshll.u32 %s473_s2, 4  ;;  %s257_s7 = int_to_ptr.vmem [resolvable:$true] %s256_s7 }
  0x3f   :  { %340 = vmatprep.subr.bf16.mxu1 %v470_v0  ;;  %s437_s8 = scalar_lea.vmem %s257_s7, 128  ;;  %p442_p11 = scmp.lt.s32.totalorder %s257_s7, %s257_s7 }
  0x40   :  { %p438_p10 = scmp.ne.s32.totalorder %s257_s7, %s437_s8  ;;  %p443_p12 = scmp.lt.s32.totalorder %s437_s8, %s437_s8 }
  0x42   :  { %342 = vmatpush3.bf16.msra.mxu1 %v341_v14  ;;  %p444_p13 = por %p443_p12, %p442_p11 }
  0x43   :  { %343 = vmatprep.subr.bf16.mxu1 %v470_v0 }
  0x44   :  { %p445_p0 = pnand %p444_p13, %p438_p10 }
  0x46   :  { %345 = vmatpush3.bf16.msra.mxu1 %v344_v17 }
  0x47   :  { %346 = vmatprep.subr.bf16.mxu1 %v470_v0 }
  0x4a   :  { %348 = vmatpush3.bf16.msra.mxu1 %v347_v20 }
  0x4b   :  { %349 = vmatprep.subr.bf16.mxu1 %v470_v0 }
  0x4e   :  { %351 = vmatpush3.bf16.msra.mxu1 %v350_v23 }
  0x4f   :  { %352 = vmatprep.subr.bf16.mxu1 %v470_v0 }
  0x52   :  { %354 = vmatpush3.bf16.msra.mxu1 %v353_v26 }
  0x53   :  { %355 = vmatprep.subr.bf16.mxu1 %v470_v0 }
  0x56   :  { %357 = vmatpush3.bf16.msra.mxu1 %v356_v29 }
 0x110   :  { %v140_v31 = vpop.f32.mrb[0].mxu0 }
 0x111   :  { %v141_v32 = vadd.f32 %v266_v30, %v140_v31  ;;  %v295_v33 = vpop.f32.mrb[1].mxu0 }
 0x113   :  { %v144_v34 = vmax.f32 %v141_v32, 0.0 }
 0x115   :  { %329 = vmatmul.mubr.f32.vlgmr.msra.gmra.mrb[0].mxu1 %v144_v34 }
 0x1e8   :  { %v236_v36 = vpop.f32.mrb[0].mxu1 }
 0x1e9   :  { %v237_v37 = vadd.f32 %v268_v35, %v236_v36  ;;  %v330_v38 = vpop.f32.mrb[1].mxu1 }
 0x1eb   :  { %240 = vmax.xlane.f32.xlu0 %v237_v37 }
 0x278   :  { %v241_v39 = vpop.xlane.xlu0 %240 }
 0x279   :  { %v242_v40 = vsub.f32 %v237_v37, %v241_v39 }
 0x27b   :  { %v243_v41 = vmul.f32 1.442695, %v242_v40 }
 0x27d   :  { %367 = vpow2.f32 %v243_v41 }
 0x287   :  { %v368_v42 = vpop.eup %367 }
 0x288   :  { %245 = vadd.xlane.f32.xlu0 %v368_v42 }
 0x315   :  { %v246_v43 = vpop.xlane.xlu0 %245 }
 0x316   :  { %369 = vrcp.f32 %v246_v43 }
 0x320   :  { %v370_v44 = vpop.eup %369 }
 0x321   :  { %v248_v45 = vmul.f32 %v370_v44, %v368_v42 }
 0x323   :  { %249 = vst [vmem:[#allocation9] sm:$0xff] %v248_v45 }
 0x324   :  { %448 = shalt.err (!%p445_p0)
}
 0x325   :  { %s449_s10 = scalar_lea.hbm %s569_s5, 128 }
 0x326   :  { %p450_p1 = scmp.ne.s32.totalorder %s569_s5, %s449_s10  ;;  %p453_p2 = scmp.lt.u32.totalorder %s449_s10, %s569_s5 }
 0x328   :  { %p455_p3 = pnand %p453_p2, %p450_p1 }
 0x32a   :  { %458 = shalt.err (!%p455_p3)
}
 0x32b   :  { %259 = dma.vmem_to_hbm [thread:$0]  %s257_s7, 128, %s569_s5, [#allocation5]  }
 0x32c   :  { %463 = dma.done.wait [#allocation5], 128  }
 0x32d   :  { %464 = vsyncadd [#allocation5], 4294967168 }
 0x32e   :  { %263 = vsyncpa [#allocation4], 1 }
 0x32f   :  { %264 = vsyncpa [#allocation7], 1 }
 0x330   :  { %265 = vsyncpa [#allocation5], 1 }

</bundles_post_ra>
